<compile_context>
chip_gen: v5e
topology: v5e:2x2
jax: 0.10.0
libtpu: 0.0.40
codegen_flags: <defaults>
</compile_context>

<pallas_src>
import functools
import math

import jax
import jax.numpy as jnp
import numpy as np
from jax.experimental import pallas as pl
from jax.experimental.pallas import tpu as pltpu

_LN2 = math.log(2.0)


def _round_up(x, m):
    return ((x + m - 1) // m) * m


def _vmem_capacity_bytes():
    """Physical VMEM per TensorCore (64 MiB v7x, 128 MiB v5e/v6e)."""
    try:
        return int(pltpu.get_tpu_info().vmem_capacity_bytes)
    except Exception:
        pass
    try:
        kind = jax.devices()[0].device_kind.lower()
    except Exception:
        kind = ""
    if "v5" in kind or "v6" in kind:
        return 128 * 1024 * 1024
    return 64 * 1024 * 1024  # v7x / unknown: be conservative


def _use_bf16_transcendentals():
    """bf16 EUP exists on v6e/v7x; keep f32 softplus elsewhere (e.g. v5e)."""
    try:
        kind = jax.devices()[0].device_kind.lower()
    except Exception:
        return False
    return ("v6" in kind) or ("v7" in kind)


def _pick_row_tile(n, vmem_cap):
    """Largest row tile whose (tm, n_pad) f32 temporaries fit comfortably."""
    budget = int(0.6 * vmem_cap)  # headroom for resident operands + scratch
    for cand in (512, 256, 128):
        n_pad = n if n <= cand else _round_up(n, cand)
        if 8 * cand * n_pad * 4 <= budget:  # ~8 live (tm, n_pad) f32 temps
            return cand
    return 128


def _dual_hash_loss_kernel(u_row_ref, ut_ref, y_row_ref, yt_ref, bsel_ref,
                           b_ref, out_ref, *, half_alpha, eta, lam, inv_nn,
                           inv_nbit, inv_bnt, n_row_tiles, n_col_tiles,
                           bf16_eup):
    g = pl.program_id(0)
    out_ref[...] = jnp.zeros_like(out_ref)

    # ---- pairwise likelihood + quantisation term for row tile `g` ----
    @pl.when(g < n_row_tiles)
    def _pairwise():
        u_rows = u_row_ref[...]                                   # (tm, bit) f32
        # Fold 0.5*alpha into the small LHS operand before the bf16 cast.
        u_lhs = (u_rows * half_alpha).astype(jnp.bfloat16)
        # bf16 (tm,K) @ (K,N) with f32 accumulation: MXU-native, no relayout.
        ip = jnp.dot(u_lhs, ut_ref[...],
                     preferred_element_type=jnp.float32)          # (tm, n_pad)
        # Keep the label matmul in f32 so (yy > 0) matches the reference exactly.
        yy = jnp.dot(y_row_ref[...], yt_ref[...],
                     preferred_element_type=jnp.float32)          # (tm, n_pad)

        neg_abs_ip = -jnp.abs(ip)
        if bf16_eup:
            soft = jnp.log1p(
                jnp.exp(neg_abs_ip.astype(jnp.bfloat16))).astype(jnp.float32)
        else:
            soft = jnp.log1p(jnp.exp(neg_abs_ip))
        # max(ip,0) - s*ip  ==  relu(-ip) if s else relu(ip)  (s never built)
        hinge = jnp.maximum(jnp.where(yy > 0.0, -ip, ip), 0.0)
        ll_sum = jnp.sum(soft + hinge)

        # Padded rows of bsel and u are both zero -> d == 0, no mask needed.
        d = bsel_ref[...] - u_rows                                # (tm, bit)
        quan_sum = jnp.sum(d * d)

        out_ref[...] += ll_sum * inv_nn + quan_sum * (eta * inv_nbit)

    # ---- streamed non-convex regulariser for B column tile `g` ----
    @pl.when(g < n_col_tiles)
    def _ncvx():
        b = b_ref[...].astype(jnp.float32)       # (bit, tn); padded cols +1 -> 0
        out_ref[...] += jnp.sum(jnp.abs(1.0 - jnp.abs(b))) * (lam * inv_bnt)


def dual_hash_loss(u, y, ind, B, config, *, row_tile=None, b_col_tile=2048):
    """Pallas implementation of DualHashLoss.forward. Returns a scalar f32."""
    alpha = float(config["alpha"])
    eta = float(config["eta"])
    lam = float(config["lambda"])

    n, bit = u.shape
    c = y.shape[1]
    num_train = B.shape[1]

    vmem_cap = _vmem_capacity_bytes()
    if row_tile is None:
        row_tile = _pick_row_tile(n, vmem_cap)
    bf16_eup = _use_bf16_transcendentals()

    u = u.astype(jnp.float32)
    y = y.astype(jnp.float32)
    # Indexing glue: gather the columns selected by `ind`, hand the kernel the
    # (n, bit) slab so it never transposes in VMEM.
    bsel_t = jnp.take(B, ind, axis=1).T.astype(jnp.float32)          # (n, bit)

    # Row tiling of the (n, n) likelihood block.
    if n <= row_tile:
        tm, n_pad = n, n
    else:
        tm = row_tile
        n_pad = _round_up(n, tm)
    # Column tiling of B for the streamed ncvx term (last dim multiple of 128).
    if num_train <= b_col_tile:
        tn, nt_pad = num_train, num_train
    else:
        tn = b_col_tile
        nt_pad = _round_up(num_train, tn)

    u_p, y_p, bsel_p = u, y, bsel_t
    if n_pad != n:
        u_p = jnp.pad(u_p, ((0, n_pad - n), (0, 0)))
        y_p = jnp.pad(y_p, ((0, n_pad - n), (0, 0)))
        bsel_p = jnp.pad(bsel_p, ((0, n_pad - n), (0, 0)))
    # Stream B in bf16 (+/-1 exactly representable); pad with +1 -> |1-|B|| = 0.
    b_p = B.astype(jnp.bfloat16)
    if nt_pad != num_train:
        b_p = jnp.pad(b_p, ((0, 0), (0, nt_pad - num_train)),
                      constant_values=1.0)

    # Pre-transposed resident MXU RHS operands, cast once in the wrapper.
    ut_bf = u_p.T.astype(jnp.bfloat16)                            # (bit, n_pad)
    yt_f32 = y_p.T                                                # (c,   n_pad)

    n_row_tiles = n_pad // tm
    n_col_tiles = nt_pad // tn
    grid_g = max(n_row_tiles, n_col_tiles)

    kernel = functools.partial(
        _dual_hash_loss_kernel,
        half_alpha=0.5 * alpha, eta=eta, lam=lam,
        inv_nn=1.0 / (n * n), inv_nbit=1.0 / (n * bit),
        inv_bnt=1.0 / (bit * num_train),
        n_row_tiles=n_row_tiles, n_col_tiles=n_col_tiles, bf16_eup=bf16_eup)

    # VMEM budget: double-buffered inputs + (tm, n_pad) f32 temporaries + slack.
    est_vmem = (2 * (tm * bit * 4 + bit * n_pad * 2 + tm * c * 4
                     + c * n_pad * 4 + tm * bit * 4 + bit * tn * 2
                     + 8 * 128 * 4)
                + 8 * tm * n_pad * 4
                + (4 << 20))
    vmem_limit = int(min(vmem_cap - (8 << 20),        # compiler scratch headroom
                         max(32 << 20, est_vmem)))

    partials = pl.pallas_call(
        kernel,
        out_shape=jax.ShapeDtypeStruct((grid_g, 8, 128), jnp.float32),
        grid=(grid_g,),
        in_specs=[
            # f32 u row tiles (quan term + cheap bf16 cast of the small LHS).
            pl.BlockSpec((tm, bit), lambda g: (jnp.minimum(g, n_row_tiles - 1), 0)),
            # Resident bf16 u^T (constant block index -> fetched once).
            pl.BlockSpec((bit, n_pad), lambda g: (0, 0)),
            # f32 y row tiles and resident f32 y^T.
            pl.BlockSpec((tm, c), lambda g: (jnp.minimum(g, n_row_tiles - 1), 0)),
            pl.BlockSpec((c, n_pad), lambda g: (0, 0)),
            # B[:, ind].T row tiles for the quan term.
            pl.BlockSpec((tm, bit), lambda g: (jnp.minimum(g, n_row_tiles - 1), 0)),
            # Streamed bf16 B column tiles for the ncvx term.
            pl.BlockSpec((bit, tn), lambda g: (0, jnp.minimum(g, n_col_tiles - 1))),
        ],
        # Per-step lane-dense partial sums: no shared scratch, grid is parallel.
        out_specs=pl.BlockSpec((1, 8, 128), lambda g: (g, 0, 0)),
        compiler_params=pltpu.CompilerParams(
            dimension_semantics=("parallel",),
            vmem_limit_bytes=vmem_limit),
    )(u_p, ut_bf, y_p, yt_f32, bsel_p, b_p)

    total = jnp.sum(partials[:, 0, 0])
    if n_pad != n:
        # Every padded (row, col) pair contributes exactly log(2): ip=0, s=0.
        total = total - (n_pad * n_pad - n * n) * _LN2 / (n * n)
    return total


def _reference_loss(u, y, ind, B, config):
    """Pure-JAX reference mirroring the PyTorch forward, for a sanity check."""
    alpha, eta, lam = config["alpha"], config["eta"], config["lambda"]
    ip = alpha * (u @ u.T) * 0.5
    s = (y @ y.T > 0).astype(jnp.float32)
    ll = jnp.log(1.0 + jnp.exp(-jnp.abs(ip))) + jnp.maximum(ip, 0.0) - s * ip
    likelihood = jnp.mean(ll)
    quan = jnp.mean((B[:, ind] - u.T) ** 2)
    ncvx = jnp.mean(jnp.abs(1.0 - jnp.abs(B)))
    return likelihood + eta * quan + lam * ncvx


if __name__ == "__main__":
    # Small deterministic shapes implied by the forward:
    #   u: (N, bit), y: (N, C), ind: (N,), B: (bit, num_train)
    N, BIT, C, NUM_TRAIN = 8, 32, 4, 64
    config = {"alpha": 0.1, "eta": 0.1, "lambda": 0.1}

    key = jax.random.PRNGKey(0)
    k_u, k_y, k_ind, k_b = jax.random.split(key, 4)

    u = jax.random.normal(k_u, (N, BIT), dtype=jnp.float32)
    labels = jax.random.randint(k_y, (N,), 0, C)
    y = jax.nn.one_hot(labels, C, dtype=jnp.float32)
    ind = jax.random.permutation(k_ind, NUM_TRAIN)[:N]
    B = jnp.sign(jax.random.normal(k_b, (BIT, NUM_TRAIN), dtype=jnp.float32))
    B = jnp.where(B == 0, 1.0, B)

    loss = jax.block_until_ready(dual_hash_loss(u, y, ind, B, config))
    ref = jax.block_until_ready(_reference_loss(u, y, ind, B, config))

    # bf16 MXU matmul + (on v6e/v7x) bf16 EUP softplus -> loosened tolerance.
    assert np.allclose(np.asarray(loss), np.asarray(ref), rtol=1e-2, atol=1e-2), (
        f"pallas={loss} ref={ref}")
    print("KERNEL_OK")
</pallas_src>

<mosaic_0001>
module attributes {stable_mosaic.version = 11 : i64} {
  func.func @_dual_hash_loss_kernel(%arg0: i32, %arg1: memref<8x32xf32, #tpu.memory_space<vmem>>, %arg2: memref<32x8xbf16, #tpu.memory_space<vmem>>, %arg3: memref<8x4xf32, #tpu.memory_space<vmem>>, %arg4: memref<4x8xf32, #tpu.memory_space<vmem>>, %arg5: memref<8x32xf32, #tpu.memory_space<vmem>>, %arg6: memref<32x64xbf16, #tpu.memory_space<vmem>>, %arg7: memref<1x8x128xf32, #tpu.memory_space<vmem>>) attributes {dimension_semantics = [#tpu.dimension_semantics<parallel>], iteration_bounds = array<i64: 1>, scalar_prefetch = 0 : i64, scratch_operands = 0 : i64, tpu.core_type = #tpu.core_type<tc>, window_params = [{transform_indices = @transform_0, window_bounds = array<i64: 8, 32>}, {pipeline_mode = #tpu.pipeline_mode<synchronous>, transform_indices = @transform_1, window_bounds = array<i64: 32, 8>}, {transform_indices = @transform_2, window_bounds = array<i64: 8, 4>}, {pipeline_mode = #tpu.pipeline_mode<synchronous>, transform_indices = @transform_3, window_bounds = array<i64: 4, 8>}, {transform_indices = @transform_4, window_bounds = array<i64: 8, 32>}, {transform_indices = @transform_5, window_bounds = array<i64: 32, 64>}, {transform_indices = @transform_6, window_bounds = array<i64: 1, 8, 128>}]} {
    %cst = arith.constant 0.000000e+00 : f32
    %0 = vector.broadcast %cst : f32 to vector<1x8x128xf32>
    %c0 = arith.constant 0 : index
    %c0_0 = arith.constant 0 : index
    %c0_1 = arith.constant 0 : index
    %1 = vector.load %arg7[%c0, %c0_0, %c0_1] : memref<1x8x128xf32, #tpu.memory_space<vmem>>, vector<1x8x128xf32>
    tpu.vector_store %arg7[%c0, %c0_0, %c0_1], %0 {strides = array<i32>} : memref<1x8x128xf32, #tpu.memory_space<vmem>>, vector<1x8x128xf32>,
    %c1_i32 = arith.constant 1 : i32
    %2 = arith.cmpi slt, %arg0, %c1_i32 : i32
    %3 = arith.extui %2 : i1 to i32
    %c0_i32 = arith.constant 0 : i32
    %4 = arith.cmpi ne, %3, %c0_i32 : i32
    scf.if %4 {
      %c0_4 = arith.constant 0 : index
      %c0_5 = arith.constant 0 : index
      %8 = vector.load %arg1[%c0_4, %c0_5] : memref<8x32xf32, #tpu.memory_space<vmem>>, vector<8x32xf32>
      %cst_6 = arith.constant 5.000000e-02 : f32
      %9 = vector.broadcast %cst_6 : f32 to vector<8x32xf32>
      %10 = arith.mulf %8, %9 : vector<8x32xf32>
      %11 = arith.truncf %10 : vector<8x32xf32> to vector<8x32xbf16>
      %c0_7 = arith.constant 0 : index
      %c0_8 = arith.constant 0 : index
      %12 = vector.load %arg2[%c0_7, %c0_8] : memref<32x8xbf16, #tpu.memory_space<vmem>>, vector<32x8xbf16>
      %cst_9 = arith.constant dense<0.000000e+00> : vector<8x8xf32>
      %13 = tpu.matmul %11, %12, %cst_9 {dimension_numbers = #tpu.dot_dimension_numbers<[1], [0], [0], [1], [0, 0, 1, 1], [], []>} : vector<8x32xbf16>, vector<32x8xbf16>, vector<8x8xf32> -> vector<8x8xf32>
      %c0_10 = arith.constant 0 : index
      %c0_11 = arith.constant 0 : index
      %14 = vector.load %arg3[%c0_10, %c0_11] : memref<8x4xf32, #tpu.memory_space<vmem>>, vector<8x4xf32>
      %c0_12 = arith.constant 0 : index
      %c0_13 = arith.constant 0 : index
      %15 = vector.load %arg4[%c0_12, %c0_13] : memref<4x8xf32, #tpu.memory_space<vmem>>, vector<4x8xf32>
      %cst_14 = arith.constant dense<0.000000e+00> : vector<8x8xf32>
      %16 = tpu.matmul %14, %15, %cst_14 {dimension_numbers = #tpu.dot_dimension_numbers<[1], [0], [0], [1], [0, 0, 1, 1], [], []>} : vector<8x4xf32>, vector<4x8xf32>, vector<8x8xf32> -> vector<8x8xf32>
      %17 = math.absf %13 : vector<8x8xf32>
      %cst_15 = arith.constant 0.000000e+00 : f32
      %18 = vector.broadcast %cst_15 : f32 to vector<8x8xf32>
      %19 = arith.subf %18, %17 : vector<8x8xf32>
      %20 = math.exp %19 : vector<8x8xf32>
      %21 = math.log1p %20 : vector<8x8xf32>
      %cst_16 = arith.constant 0.000000e+00 : f32
      %22 = vector.broadcast %cst_16 : f32 to vector<8x8xf32>
      %23 = arith.cmpf ogt, %16, %22 : vector<8x8xf32>
      %cst_17 = arith.constant 0.000000e+00 : f32
      %24 = vector.broadcast %cst_17 : f32 to vector<8x8xf32>
      %25 = arith.subf %24, %13 : vector<8x8xf32>
      %26 = arith.select %23, %25, %13 : vector<8x8xi1>, vector<8x8xf32>
      %cst_18 = arith.constant 0.000000e+00 : f32
      %27 = vector.broadcast %cst_18 : f32 to vector<8x8xf32>
      %28 = arith.maximumf %26, %27 : vector<8x8xf32>
      %29 = arith.addf %21, %28 : vector<8x8xf32>
      %30 = vector.shape_cast %29 : vector<8x8xf32> to vector<1x8x8xf32>
      %cst_19 = arith.constant dense<0.000000e+00> : vector<1xf32>
      %31 = vector.multi_reduction <add>, %30, %cst_19 [1, 2] : vector<1x8x8xf32> to vector<1xf32>
      %32 = vector.shape_cast %31 : vector<1xf32> to vector<1x1x1xf32>
      %33 = vector.extract %32[0, 0, 0] : f32 from vector<1x1x1xf32>
      %c0_20 = arith.constant 0 : index
      %c0_21 = arith.constant 0 : index
      %34 = vector.load %arg5[%c0_20, %c0_21] : memref<8x32xf32, #tpu.memory_space<vmem>>, vector<8x32xf32>
      %35 = arith.subf %34, %8 : vector<8x32xf32>
      %36 = arith.mulf %35, %35 : vector<8x32xf32>
      %37 = vector.shape_cast %36 : vector<8x32xf32> to vector<1x8x32xf32>
      %cst_22 = arith.constant dense<0.000000e+00> : vector<1xf32>
      %38 = vector.multi_reduction <add>, %37, %cst_22 [1, 2] : vector<1x8x32xf32> to vector<1xf32>
      %39 = vector.shape_cast %38 : vector<1xf32> to vector<1x1x1xf32>
      %40 = vector.extract %39[0, 0, 0] : f32 from vector<1x1x1xf32>
      %c0_23 = arith.constant 0 : index
      %c0_24 = arith.constant 0 : index
      %c0_25 = arith.constant 0 : index
      %41 = vector.load %arg7[%c0_23, %c0_24, %c0_25] : memref<1x8x128xf32, #tpu.memory_space<vmem>>, vector<1x8x128xf32>
      %cst_26 = arith.constant 1.562500e-02 : f32
      %42 = arith.mulf %33, %cst_26 : f32
      %cst_27 = arith.constant 3.906250e-04 : f32
      %43 = arith.mulf %40, %cst_27 : f32
      %44 = arith.addf %42, %43 : f32
      %45 = vector.broadcast %44 : f32 to vector<1x8x128xf32>
      %46 = arith.addf %41, %45 : vector<1x8x128xf32>
      %c0_28 = arith.constant 0 : index
      %c0_29 = arith.constant 0 : index
      %c0_30 = arith.constant 0 : index
      %47 = vector.load %arg7[%c0_28, %c0_29, %c0_30] : memref<1x8x128xf32, #tpu.memory_space<vmem>>, vector<1x8x128xf32>
      tpu.vector_store %arg7[%c0_28, %c0_29, %c0_30], %46 {strides = array<i32>} : memref<1x8x128xf32, #tpu.memory_space<vmem>>, vector<1x8x128xf32>,
    } else {
    }
    %c1_i32_2 = arith.constant 1 : i32
    %5 = arith.cmpi slt, %arg0, %c1_i32_2 : i32
    %6 = arith.extui %5 : i1 to i32
    %c0_i32_3 = arith.constant 0 : i32
    %7 = arith.cmpi ne, %6, %c0_i32_3 : i32
    scf.if %7 {
      %c0_4 = arith.constant 0 : index
      %c0_5 = arith.constant 0 : index
      %8 = vector.load %arg6[%c0_4, %c0_5] : memref<32x64xbf16, #tpu.memory_space<vmem>>, vector<32x64xbf16>
      %9 = arith.extf %8 : vector<32x64xbf16> to vector<32x64xf32>
      %c0_6 = arith.constant 0 : index
      %c0_7 = arith.constant 0 : index
      %c0_8 = arith.constant 0 : index
      %10 = vector.load %arg7[%c0_6, %c0_7, %c0_8] : memref<1x8x128xf32, #tpu.memory_space<vmem>>, vector<1x8x128xf32>
      %11 = math.absf %9 : vector<32x64xf32>
      %cst_9 = arith.constant 1.000000e+00 : f32
      %12 = vector.broadcast %cst_9 : f32 to vector<32x64xf32>
      %13 = arith.subf %12, %11 : vector<32x64xf32>
      %14 = math.absf %13 : vector<32x64xf32>
      %15 = vector.shape_cast %14 : vector<32x64xf32> to vector<1x32x64xf32>
      %cst_10 = arith.constant dense<0.000000e+00> : vector<1xf32>
      %16 = vector.multi_reduction <add>, %15, %cst_10 [1, 2] : vector<1x32x64xf32> to vector<1xf32>
      %17 = vector.shape_cast %16 : vector<1xf32> to vector<1x1x1xf32>
      %18 = vector.extract %17[0, 0, 0] : f32 from vector<1x1x1xf32>
      %cst_11 = arith.constant 4.88281257E-5 : f32
      %19 = arith.mulf %18, %cst_11 : f32
      %20 = vector.broadcast %19 : f32 to vector<1x8x128xf32>
      %21 = arith.addf %10, %20 : vector<1x8x128xf32>
      %c0_12 = arith.constant 0 : index
      %c0_13 = arith.constant 0 : index
      %c0_14 = arith.constant 0 : index
      %22 = vector.load %arg7[%c0_12, %c0_13, %c0_14] : memref<1x8x128xf32, #tpu.memory_space<vmem>>, vector<1x8x128xf32>
      tpu.vector_store %arg7[%c0_12, %c0_13, %c0_14], %21 {strides = array<i32>} : memref<1x8x128xf32, #tpu.memory_space<vmem>>, vector<1x8x128xf32>,
    } else {
    }
    return
  }
  func.func @transform_0(%arg0: i32) -> (i32, i32) {
    %c0_i32 = arith.constant 0 : i32
    %0 = arith.minsi %arg0, %c0_i32 : i32
    %c0_i32_0 = arith.constant 0 : i32
    %c0_i32_1 = arith.constant 0 : i32
    return %0, %c0_i32_0 : i32, i32
  }
  func.func @transform_1(%arg0: i32) -> (i32, i32) {
    %c0_i32 = arith.constant 0 : i32
    %c0_i32_0 = arith.constant 0 : i32
    %c0_i32_1 = arith.constant 0 : i32
    return %c0_i32, %c0_i32_0 : i32, i32
  }
  func.func @transform_2(%arg0: i32) -> (i32, i32) {
    %c0_i32 = arith.constant 0 : i32
    %0 = arith.minsi %arg0, %c0_i32 : i32
    %c0_i32_0 = arith.constant 0 : i32
    %c0_i32_1 = arith.constant 0 : i32
    return %0, %c0_i32_0 : i32, i32
  }
  func.func @transform_3(%arg0: i32) -> (i32, i32) {
    %c0_i32 = arith.constant 0 : i32
    %c0_i32_0 = arith.constant 0 : i32
    %c0_i32_1 = arith.constant 0 : i32
    return %c0_i32, %c0_i32_0 : i32, i32
  }
  func.func @transform_4(%arg0: i32) -> (i32, i32) {
    %c0_i32 = arith.constant 0 : i32
    %0 = arith.minsi %arg0, %c0_i32 : i32
    %c0_i32_0 = arith.constant 0 : i32
    %c0_i32_1 = arith.constant 0 : i32
    return %0, %c0_i32_0 : i32, i32
  }
  func.func @transform_5(%arg0: i32) -> (i32, i32) {
    %c0_i32 = arith.constant 0 : i32
    %0 = arith.minsi %arg0, %c0_i32 : i32
    %c0_i32_0 = arith.constant 0 : i32
    %c0_i32_1 = arith.constant 0 : i32
    return %c0_i32_0, %0 : i32, i32
  }
  func.func @transform_6(%arg0: i32) -> (i32, i32, i32) {
    %c0_i32 = arith.constant 0 : i32
    %c0_i32_0 = arith.constant 0 : i32
    %c0_i32_1 = arith.constant 0 : i32
    return %arg0, %c0_i32, %c0_i32_0 : i32, i32, i32
  }
}

</mosaic_0001>

<bundles_post_ra>
// kernel: tpu_custom_call.1
= control target key start
LH: loop header
LB: loop body
LE: loop exit
PB: predicated region body
PF: predicated region fallthrough
CT: control target
= control target key end

     0   :  { %11 = vsyncpa [#allocation3], 0  ;;  %s375_s0 = inlined_call_operand.vmem [shape: f32[8,32], index: 0, kind: input, shape index: {}]   ;;  %s376_s1 = inlined_call_operand.vmem [shape: bf16[32,8], index: 1, kind: input, shape index: {}]   ;;  %s377_s2 = inlined_call_operand.vmem [shape: f32[8,4], index: 2, kind: input, shape index: {}]   ;;  %s378_s3 = inlined_call_operand.vmem [shape: f32[4,8], index: 3, kind: input, shape index: {}]   ;;  %s379_s4 = inlined_call_operand.hbm [shape: f32[8,32], index: 4, kind: input, shape index: {}]   ;;  %s380_s5 = inlined_call_operand.vmem [shape: bf16[32,64], index: 5, kind: input, shape index: {}]   ;;  %s381_s6 = inlined_call_operand.hbm [shape: f32[1,8,128], index: 6, kind: output, shape index: {}]  }
   0x1   :  { %12 = vsyncpa [#allocation4], 0  ;;  %s26_s23 = sshll.u32 %s379_s4, 4  ;;  %s305_s24 = smov [#allocation2]   ;;  %s27_s23 = int_to_ptr.hbm [resolvable:$true] %s26_s23 }
   0x2   :  { %s28_s25 = sshll.u32 %s305_s24, 4  ;;  %s29_s25 = int_to_ptr.vmem [resolvable:$true] %s28_s25 }
   0x3   :  { %31 = dma.hbm_to_vmem [thread:$0]  %s27_s23, 128, %s29_s25, [#allocation3]  }
   0x4   :  { %301 = dma.done.wait [#allocation3], 128  }
   0x5   :  { %302 = vsyncadd [#allocation3], 4294967168  ;;  %vm86_vm0 = vcmask 1043456   ;;  %v230_v0 = vld [vmem:[%s376_s1 + $0x8] sm:$0xff]  ;;  %v351_v1 = vld [vmem:[%s375_s0] sm:$0xff]  ;;  %vm82_vm1 = vcmask 31744  }
   0x6   :  { %v45_v2 = vmul.f32 0.05, %v351_v1  ;;  %v81_v3 = vld [vmem:[%s378_s3] sm:$0xf]  ;;  %73 = vmatpush.bf16.msra.mxu0 %v230_v0  ;;  %vm63_vm2 = vcmask 261120   ;;  %v239_v10 = vld [vmem:[%s380_s5 + $0x8] sm:$0xff]  }
   0x7   :  { %v80_v4 = vld [vmem:[%s377_s2] sm:$0xff]  ;;  %227 = vmatpush.msk.msra.mxu1 %vm86_vm0, %v81_v3  ;;  %v237_v11 = vunpack.c.l.bf16 %v239_v10  ;;  %v238_v14 = vunpack.c.h.bf16 %v239_v10  ;;  %vm180_vm3 = vcmask 523264   ;;  %vm128_vm6 = vcmask 64512   ;;  %s306_s17 = smov [#allocation5]   ;;  %s208_s21 = sshll.u32 %s381_s6, 4  ;;  %s209_s21 = int_to_ptr.hbm [resolvable:$true] %s208_s21 }
   0x8   :  { %v229_v5 = vld [vmem:[%s376_s1] sm:$0xff]  ;;  %228 = vmatmul.msk.f32.vlgmr.msra.gmra.mxu1 %vm82_vm1, %v80_v4  ;;  %v46_v6 = vpack.c.bf16 %v45_v2, %v45_v2  ;;  %s206_s18 = sshll.u32 %s306_s17, 4  ;;  %s207_s18 = int_to_ptr.vmem [resolvable:$true] %s206_s18 }
   0x9   :  { %v232_v7 = vld [vmem:[%s380_s5] sm:$0xff]   ;;  %v170_v15 = vand.u32 2147483647, %v237_v11  ;;  %v171_v18 = vand.u32 2147483647, %v238_v14 }
   0xa   :  { %74 = vmatpush.bf16.msra.mxu0 %v229_v5  ;;  %v233_v8 = vunpack.c.l.bf16 %v232_v7  ;;  %v234_v9 = vunpack.c.h.bf16 %v232_v7  ;;  %v139_v48 = vld [vmem:[#allocation2] sm:$0xff] }
   0xb   :  { %v174_v19 = vsub.f32 1.0, %v170_v15  ;;  %v175_v22 = vsub.f32 1.0, %v171_v18  ;;  %v140_v52 = vsub.f32 %v139_v48, %v351_v1 }
   0xc   :  { %v168_v12 = vand.u32 2147483647, %v233_v8  ;;  %v169_v13 = vand.u32 2147483647, %v234_v9 }
   0xd   :  { %226 = vmatmul.msk.bf16.vlgmr.msra.gmra.mxu0 %vm63_vm2, %v46_v6  ;;  %v178_v23 = vand.u32 2147483647, %v174_v19  ;;  %v179_v26 = vand.u32 2147483647, %v175_v22  ;;  %v141_v54 = vmul.f32 %v140_v52, %v140_v52 }
   0xe   :  { %v172_v16 = vsub.f32 1.0, %v168_v12  ;;  %v173_v17 = vsub.f32 1.0, %v169_v13 }
   0xf   :  { %v184_v28 = vsel %vm180_vm3, %v178_v23, 0.0  ;;  %v186_v31 = vsel %vm180_vm3, %v179_v26, 0.0  ;;  %v142_v55 = vsel %vm63_vm2, %v141_v54, 0.0 }
  0x10   :  { %v176_v20 = vand.u32 2147483647, %v172_v16  ;;  %v177_v21 = vand.u32 2147483647, %v173_v17 }
  0x12   :  { %v181_v24 = vsel %vm180_vm3, %v176_v20, 0.0  ;;  %v182_v25 = vsel %vm180_vm3, %v177_v21, 0.0 }
  0x13   :  { %v183_v27 = vadd.f32 %v182_v25, %v181_v24 }
  0x15   :  { %v185_v30 = vadd.f32 %v184_v28, %v183_v27 }
  0x17   :  { %v187_v33 = vadd.f32 %v186_v31, %v185_v30 }
  0x19   :  { %188 = vadd.xlane.f32.xlu1 %v187_v33 }
  0x85   :  { %v107_v39 = vpop.f32.mrf.mxu1 }
  0x86   :  { %vm123_vm4 = vcmp.gt.f32.partialorder %v107_v39, 0.0 }
  0x8a   :  { %v76_v29 = vpop.f32.mrf.mxu0 }
  0x8b   :  { %v110_v32 = vand.u32 2147483647, %v76_v29  ;;  %v124_v41 = vsub.f32 0.0, %v76_v29 }
  0x8c   :  { %v189_v56 = vpop.xlane.xlu1 %188 }
  0x8d   :  { %v111_v34 = vsub.f32 0.0, %v110_v32  ;;  %v125_v44 = vsel %vm123_vm4, %v124_v41, %v76_v29  ;;  %v190_v58 = vrot.slane %v189_v56, 4 }
  0x8e   :  { %v126_v49 = vmax.f32 %v125_v44, 0.0 }
  0x8f   :  { %v112_v35 = vmul.f32 1.442695, %v111_v34  ;;  %v191_v61 = vadd.f32 %v190_v58, %v189_v56 }
  0x91   :  { %249 = vpow2.f32 %v112_v35  ;;  %v192_v2 = vrot.slane %v191_v61, 2 }
  0x92   :  { %v78_v36 = vpop.f32.mrf.mxu0 }
  0x93   :  { %v193_v6 = vadd.f32 %v192_v2, %v191_v61 }
  0x95   :  { %v194_v9 = vrot.slane %v193_v6, 1 }
  0x97   :  { %v250_v37 = vpop.eup %249  ;;  %v195_v12 = vadd.f32 %v194_v9, %v193_v6 }
  0x98   :  { %v114_v38 = vadd.f32 1.0, %v250_v37  ;;  %v117_v40 = vmul.f32 -0.5, %v250_v37  ;;  %v120_v43 = vand.u32 2147483647, %v250_v37 }
  0x9a   :  { %251 = vlog2.f32 %v114_v38  ;;  %v118_v42 = vadd.f32 1.0, %v117_v40  ;;  %vm121_vm5 = vcmp.lt.f32.partialorder %v120_v43, 0.0004427343 }
  0x9c   :  { %v119_v47 = vmul.f32 %v250_v37, %v118_v42 }
  0xa0   :  { %v252_v45 = vpop.eup %251 }
  0xa1   :  { %v116_v46 = vmul.f32 0.6931472, %v252_v45 }
  0xa3   :  { %v122_v50 = vsel %vm121_vm5, %v119_v47, %v116_v46 }
  0xa4   :  { %v127_v51 = vadd.f32 %v126_v49, %v122_v50 }
  0xa6   :  { %v129_v53 = vsel %vm128_vm6, %v127_v51, 0.0 }
  0xa7   :  { %130 = vadd.xlane.f32.xlu0 %v129_v53 }
  0xaf   :  { %143 = vadd.xlane.f32.xlu0 %v142_v55 }
 0x11a   :  { %v131_v57 = vpop.xlane.xlu0 %130 }
 0x11b   :  { %v132_v59 = vrot.slane %v131_v57, 4 }
 0x11d   :  { %v133_v60 = vadd.f32 %v132_v59, %v131_v57 }
 0x11f   :  { %v134_v62 = vrot.slane %v133_v60, 2 }
 0x121   :  { %v135_v63 = vadd.f32 %v134_v62, %v133_v60 }
 0x122   :  { %v144_v0 = vpop.xlane.xlu0 %143 }
 0x123   :  { %v145_v3 = vrot.slane %v144_v0, 4  ;;  %v136_v4 = vrot.slane %v135_v63, 1 }
 0x125   :  { %v146_v5 = vadd.f32 %v145_v3, %v144_v0  ;;  %v137_v1 = vadd.f32 %v136_v4, %v135_v63 }
 0x127   :  { %v147_v7 = vrot.slane %v146_v5, 2  ;;  %240 = vpush %v137_v1 }
 0x129   :  { %v148_v8 = vadd.f32 %v147_v7, %v146_v5 }
 0x12b   :  { %v149_v10 = vrot.slane %v148_v8, 1 }
 0x12d   :  { %v150_v11 = vadd.f32 %v149_v10, %v148_v8 }
 0x12f   :  { %242 = vpush %v150_v11 }
 0x130   :  { %244 = vpush %v195_v12 }
 0x158   :  { %s241_s1 = spop %240 }
 0x159   :  { %s153_s5 = smul.f32 0.015625, %s241_s1 }
 0x160   :  { %s243_s12 = spop %242 }
 0x161   :  { %s154_s13 = smul.f32 0.000390625, %s243_s12  ;;  %s245_s14 = spop %244 }
 0x162   :  { %s197_s16 = smul.f32 4.8828126e-05, %s245_s14 }
 0x163   :  { %s155_s15 = sadd.f32 %s154_s13, %s153_s5 }
 0x164   :  { %v198_v14 = vstv %s197_s16 }
 0x165   :  { %v156_v13 = vstv %s155_s15 }
 0x166   :  { %v199_v15 = vadd.f32 %v198_v14, %v156_v13 }
 0x168   :  { %200 = vst [vmem:[#allocation5] sm:$0xff] %v199_v15 }
 0x169   :  { %211 = dma.vmem_to_hbm [thread:$0]  %s207_s18, 128, %s209_s21, [#allocation4]  }
 0x16a   :  { %303 = dma.done.wait [#allocation4], 128  }
 0x16b   :  { %304 = vsyncadd [#allocation4], 4294967168 }
 0x16c   :  { %216 = vsyncpa [#allocation3], 1 }
 0x16d   :  { %217 = vsyncpa [#allocation4], 1 }

</bundles_post_ra>
